<compile_context>
chip_gen: v6e
topology: v6e:2x2x1
jax: 0.10.0
libtpu: 0.0.40
codegen_flags: <defaults>
</compile_context>

<pallas_src>
import jax
import jax.numpy as jnp
from jax.experimental import pallas as pl
from jax.experimental.pallas import tpu as pltpu


# --------------------------- Pallas kernels ---------------------------

def _stats_kernel(pat_ref, w_ref, stats_ref):
    # pat_ref: (Kp, TM)   w_ref: (Cp, Kp)   stats_ref: (2, Cp, 1) f32 accumulator
    # stats_ref has a constant block index -> stays resident in VMEM across the grid.
    @pl.when(pl.program_id(0) == 0)
    def _init():
        stats_ref[...] = jnp.zeros_like(stats_ref)

    y = jnp.dot(w_ref[...], pat_ref[...], preferred_element_type=jnp.float32)  # (Cp, TM)
    stats_ref[0, :, :] += jnp.sum(y, axis=1, keepdims=True)        # per-channel sum
    stats_ref[1, :, :] += jnp.sum(y * y, axis=1, keepdims=True)    # per-channel sum of squares


def _apply_kernel(pat_ref, w_ref, par_ref, out_ref):
    # pat_ref: (Kp, TM)   w_ref: (Cp, Kp)   par_ref: (3, Cp, 1) = [scale, shift, alpha]
    y = jnp.dot(w_ref[...], pat_ref[...], preferred_element_type=jnp.float32)  # (Cp, TM)
    par = par_ref[...]
    z = y * par[0] + par[1]                                 # fused BN affine (one FMA)
    out_ref[...] = jnp.where(z >= 0.0, z, par[2] * z)       # PReLU


# --------------------------- Wrapper ---------------------------

def conv_bn_prelu(x, weight, bias, gamma, beta, alpha, *,
                  stride=1, padding=1, eps=1e-5, tile_m=512,
                  compute_dtype=jnp.float32):
    """x: (N, C, H, W) f32; weight: (Cout, Cin, kh, kw); alpha: scalar or (Cout,) PReLU slope.
    Returns (N, Cout, Ho, Wo).  `bias` is accepted for API parity but provably cancels under
    training-mode BatchNorm, so it is never added."""
    del bias
    assert tile_m % 128 == 0
    N, C, H, W = x.shape
    Cout, Cin, kh, kw = weight.shape
    assert Cin == C
    Ho = (H + 2 * padding - kh) // stride + 1
    Wo = (W + 2 * padding - kw) // stride + 1
    M = N * Ho * Wo
    K = C * kh * kw

    # --- glue: transposed im2col patches^T of shape (K, M), K-order = (C, kh, kw) ---
    xp = jnp.pad(x, ((0, 0), (0, 0), (padding, padding), (padding, padding)))
    taps = []
    for i in range(kh):
        for j in range(kw):
            taps.append(xp[:, :, i:i + stride * Ho:stride, j:j + stride * Wo:stride])
    pat = jnp.stack(taps, axis=0).reshape(kh, kw, N, C, Ho, Wo)
    patT = pat.transpose(3, 0, 1, 2, 4, 5).reshape(K, M)          # (K, M)
    w2 = weight.reshape(Cout, K)                                  # PyTorch OIHW flatten order

    # --- pad to TPU-friendly shapes (zero padding is exact: contributes 0 to sums) ---
    Cp = max(8, -(-Cout // 8) * 8)
    Kp = max(8, -(-K // 8) * 8)
    TM = min(tile_m, -(-M // 128) * 128)
    Mp = -(-M // TM) * TM
    nt = Mp // TM

    patT = jnp.pad(patT, ((0, Kp - K), (0, Mp - M)))
    w2 = jnp.pad(w2.astype(jnp.float32), ((0, Cp - Cout), (0, Kp - K)))

    patT_c = patT.astype(compute_dtype)
    w2_c = w2.astype(compute_dtype)

    vmem_lim = 32 * 1024 * 1024  # explicit, with headroom; fits v5e/v6e and v7x (64 MiB) VMEM

    # ---- pass 1: streaming per-channel sum / sum-of-squares over M tiles ----
    stats = pl.pallas_call(
        _stats_kernel,
        out_shape=jax.ShapeDtypeStruct((2, Cp, 1), jnp.float32),
        grid=(nt,),
        in_specs=[
            pl.BlockSpec((Kp, TM), lambda i: (0, i)),
            pl.BlockSpec((Cp, Kp), lambda i: (0, 0)),
        ],
        out_specs=pl.BlockSpec((2, Cp, 1), lambda i: (0, 0, 0)),
        compiler_params=pltpu.CompilerParams(
            dimension_semantics=("arbitrary",),
            vmem_limit_bytes=vmem_lim),
    )(patT_c, w2_c)

    # ---- finalize BN stats + fuse affine (tiny per-channel math, plain JAX) ----
    s1 = stats[0, :, 0]
    s2 = stats[1, :, 0]
    mean = s1 / float(M)
    var = jnp.maximum(s2 / float(M) - mean * mean, 0.0)
    gamma_p = jnp.pad(gamma.astype(jnp.float32), (0, Cp - Cout))
    beta_p = jnp.pad(beta.astype(jnp.float32), (0, Cp - Cout))
    alpha_b = jnp.broadcast_to(jnp.asarray(alpha, jnp.float32).reshape(-1), (Cout,))
    alpha_p = jnp.pad(alpha_b, (0, Cp - Cout))
    scale = gamma_p * jax.lax.rsqrt(var + eps)
    shift = beta_p - mean * scale
    params = jnp.stack([scale, shift, alpha_p], axis=0).reshape(3, Cp, 1)

    # ---- pass 2: normalize + PReLU; lane-dense output (Cout on sublanes, M on lanes) ----
    outT = pl.pallas_call(
        _apply_kernel,
        out_shape=jax.ShapeDtypeStruct((Cp, Mp), jnp.float32),
        grid=(nt,),
        in_specs=[
            pl.BlockSpec((Kp, TM), lambda i: (0, i)),
            pl.BlockSpec((Cp, Kp), lambda i: (0, 0)),
            pl.BlockSpec((3, Cp, 1), lambda i: (0, 0, 0)),
        ],
        out_specs=pl.BlockSpec((Cp, TM), lambda i: (0, i)),
        compiler_params=pltpu.CompilerParams(
            dimension_semantics=("parallel",),
            vmem_limit_bytes=vmem_lim),
    )(patT_c, w2_c, params)

    # (Cp, Mp) -> (Cout, N, Ho, Wo) -> NCHW (single cheap transpose)
    return outT[:Cout, :M].reshape(Cout, N, Ho, Wo).transpose(1, 0, 2, 3)


# --------------------------- Reference (plain JAX) ---------------------------

def _reference(x, weight, bias, gamma, beta, alpha, *, stride, padding, eps=1e-5):
    y = jax.lax.conv_general_dilated(
        x, weight, window_strides=(stride, stride),
        padding=((padding, padding), (padding, padding)),
        dimension_numbers=("NCHW", "OIHW", "NCHW"))
    y = y + bias[None, :, None, None]
    mean = jnp.mean(y, axis=(0, 2, 3), keepdims=True)
    var = jnp.mean((y - mean) ** 2, axis=(0, 2, 3), keepdims=True)
    y = (y - mean) * jax.lax.rsqrt(var + eps)
    y = gamma[None, :, None, None] * y + beta[None, :, None, None]
    a = jnp.broadcast_to(jnp.asarray(alpha, y.dtype).reshape(-1), (y.shape[1],))
    return jnp.where(y >= 0, y, a[None, :, None, None] * y)


if __name__ == "__main__":
    key = jax.random.PRNGKey(0)
    kx, k_w, k_b, k_g, k_bt = jax.random.split(key, 5)

    N, Cin, H, W = 2, 4, 16, 16
    Cout = 8

    x = jax.random.normal(kx, (N, Cin, H, W), dtype=jnp.float32)

    def make_params(ksz):
        fan_in = Cin * ksz * ksz
        bound = 1.0 / (fan_in ** 0.5)
        weight = jax.random.uniform(k_w, (Cout, Cin, ksz, ksz),
                                    minval=-bound, maxval=bound, dtype=jnp.float32)
        bias = jax.random.uniform(k_b, (Cout,), minval=-bound, maxval=bound,
                                  dtype=jnp.float32)
        gamma = jnp.ones((Cout,), jnp.float32) + 0.1 * jax.random.normal(k_g, (Cout,))
        beta = 0.1 * jax.random.normal(k_bt, (Cout,), dtype=jnp.float32)
        alpha = jnp.full((1,), 0.25, jnp.float32)   # nn.PReLU() default: scalar 0.25
        return weight, bias, gamma, beta, alpha

    # Config A: ConvBnPReLU constructor defaults (kernel_size=3, stride=1, padding=1).
    wA, bA, gA, btA, aA = make_params(3)
    outA = jax.block_until_ready(
        conv_bn_prelu(x, wA, bA, gA, btA, aA, stride=1, padding=1))
    refA = _reference(x, wA, bA, gA, btA, aA, stride=1, padding=1)
    assert outA.shape == (N, Cout, H, W)
    assert jnp.allclose(outA, refA, atol=2e-4, rtol=2e-4), \
        float(jnp.max(jnp.abs(outA - refA)))

    # Config B: docstring defaults (kernel_size=4, stride=2, padding=1) — downsampling GAN block.
    wB, bB, gB, btB, aB = make_params(4)
    outB = jax.block_until_ready(
        conv_bn_prelu(x, wB, bB, gB, btB, aB, stride=2, padding=1))
    refB = _reference(x, wB, bB, gB, btB, aB, stride=2, padding=1)
    assert outB.shape == (N, Cout, H // 2, W // 2)
    assert jnp.allclose(outB, refB, atol=2e-4, rtol=2e-4), \
        float(jnp.max(jnp.abs(outB - refB)))

    print("KERNEL_OK")
</pallas_src>

<mosaic_0001>
module attributes {stable_mosaic.version = 11 : i64} {
  func.func @_stats_kernel(%arg0: i32, %arg1: memref<40x512xf32, #tpu.memory_space<vmem>>, %arg2: memref<8x40xf32, #tpu.memory_space<vmem>>, %arg3: memref<2x8x1xf32, #tpu.memory_space<vmem>>) attributes {dimension_semantics = [#tpu.dimension_semantics<arbitrary>], iteration_bounds = array<i64: 1>, scalar_prefetch = 0 : i64, scratch_operands = 0 : i64, tpu.core_type = #tpu.core_type<tc>, window_params = [{transform_indices = @transform_0, window_bounds = array<i64: 40, 512>}, {pipeline_mode = #tpu.pipeline_mode<synchronous>, transform_indices = @transform_1, window_bounds = array<i64: 8, 40>}, {pipeline_mode = #tpu.pipeline_mode<synchronous>, transform_indices = @transform_2, window_bounds = array<i64: 2, 8, 1>}]} {
    %c0_i32 = arith.constant 0 : i32
    %0 = arith.cmpi eq, %arg0, %c0_i32 : i32
    %1 = arith.extui %0 : i1 to i32
    %c0_i32_0 = arith.constant 0 : i32
    %2 = arith.cmpi ne, %1, %c0_i32_0 : i32
    scf.if %2 {
      %cst_17 = arith.constant 0.000000e+00 : f32
      %23 = vector.broadcast %cst_17 : f32 to vector<2x8x1xf32>
      %c0_18 = arith.constant 0 : index
      %c0_19 = arith.constant 0 : index
      %c0_20 = arith.constant 0 : index
      %24 = vector.load %arg3[%c0_18, %c0_19, %c0_20] : memref<2x8x1xf32, #tpu.memory_space<vmem>>, vector<2x8x1xf32>
      tpu.vector_store %arg3[%c0_18, %c0_19, %c0_20], %23 {strides = array<i32>} : memref<2x8x1xf32, #tpu.memory_space<vmem>>, vector<2x8x1xf32>,
    } else {
    }
    %c0 = arith.constant 0 : index
    %c0_1 = arith.constant 0 : index
    %3 = vector.load %arg2[%c0, %c0_1] : memref<8x40xf32, #tpu.memory_space<vmem>>, vector<8x40xf32>
    %c0_2 = arith.constant 0 : index
    %c0_3 = arith.constant 0 : index
    %4 = vector.load %arg1[%c0_2, %c0_3] : memref<40x512xf32, #tpu.memory_space<vmem>>, vector<40x512xf32>
    %cst = arith.constant dense<0.000000e+00> : vector<8x512xf32>
    %5 = tpu.matmul %3, %4, %cst {dimension_numbers = #tpu.dot_dimension_numbers<[1], [0], [0], [1], [0, 0, 1, 1], [], []>} : vector<8x40xf32>, vector<40x512xf32>, vector<8x512xf32> -> vector<8x512xf32>
    %c0_4 = arith.constant 0 : index
    %c0_5 = arith.constant 0 : index
    %c0_6 = arith.constant 0 : index
    %6 = vector.load %arg3[%c0_4, %c0_5, %c0_6] : memref<2x8x1xf32, #tpu.memory_space<vmem>>, vector<1x8x1xf32>
    %7 = vector.shape_cast %6 : vector<1x8x1xf32> to vector<8x1xf32>
    %cst_7 = arith.constant dense<0.000000e+00> : vector<8xf32>
    %8 = vector.multi_reduction <add>, %5, %cst_7 [1] : vector<8x512xf32> to vector<8xf32>
    %9 = vector.shape_cast %8 : vector<8xf32> to vector<8x1xf32>
    %10 = arith.addf %7, %9 : vector<8x1xf32>
    %c0_8 = arith.constant 0 : index
    %c0_9 = arith.constant 0 : index
    %c0_10 = arith.constant 0 : index
    %11 = vector.load %arg3[%c0_8, %c0_9, %c0_10] : memref<2x8x1xf32, #tpu.memory_space<vmem>>, vector<1x8x1xf32>
    %12 = vector.shape_cast %11 : vector<1x8x1xf32> to vector<8x1xf32>
    %13 = vector.shape_cast %10 : vector<8x1xf32> to vector<1x8x1xf32>
    tpu.vector_store %arg3[%c0_8, %c0_9, %c0_10], %13 {strides = array<i32>} : memref<2x8x1xf32, #tpu.memory_space<vmem>>, vector<1x8x1xf32>,
    %c1 = arith.constant 1 : index
    %c0_11 = arith.constant 0 : index
    %c0_12 = arith.constant 0 : index
    %14 = vector.load %arg3[%c1, %c0_11, %c0_12] : memref<2x8x1xf32, #tpu.memory_space<vmem>>, vector<1x8x1xf32>
    %15 = vector.shape_cast %14 : vector<1x8x1xf32> to vector<8x1xf32>
    %16 = arith.mulf %5, %5 : vector<8x512xf32>
    %cst_13 = arith.constant dense<0.000000e+00> : vector<8xf32>
    %17 = vector.multi_reduction <add>, %16, %cst_13 [1] : vector<8x512xf32> to vector<8xf32>
    %18 = vector.shape_cast %17 : vector<8xf32> to vector<8x1xf32>
    %19 = arith.addf %15, %18 : vector<8x1xf32>
    %c1_14 = arith.constant 1 : index
    %c0_15 = arith.constant 0 : index
    %c0_16 = arith.constant 0 : index
    %20 = vector.load %arg3[%c1_14, %c0_15, %c0_16] : memref<2x8x1xf32, #tpu.memory_space<vmem>>, vector<1x8x1xf32>
    %21 = vector.shape_cast %20 : vector<1x8x1xf32> to vector<8x1xf32>
    %22 = vector.shape_cast %19 : vector<8x1xf32> to vector<1x8x1xf32>
    tpu.vector_store %arg3[%c1_14, %c0_15, %c0_16], %22 {strides = array<i32>} : memref<2x8x1xf32, #tpu.memory_space<vmem>>, vector<1x8x1xf32>,
    return
  }
  func.func @transform_0(%arg0: i32) -> (i32, i32) {
    %c0_i32 = arith.constant 0 : i32
    %c0_i32_0 = arith.constant 0 : i32
    return %c0_i32, %arg0 : i32, i32
  }
  func.func @transform_1(%arg0: i32) -> (i32, i32) {
    %c0_i32 = arith.constant 0 : i32
    %c0_i32_0 = arith.constant 0 : i32
    %c0_i32_1 = arith.constant 0 : i32
    return %c0_i32, %c0_i32_0 : i32, i32
  }
  func.func @transform_2(%arg0: i32) -> (i32, i32, i32) {
    %c0_i32 = arith.constant 0 : i32
    %c0_i32_0 = arith.constant 0 : i32
    %c0_i32_1 = arith.constant 0 : i32
    %c0_i32_2 = arith.constant 0 : i32
    return %c0_i32, %c0_i32_0, %c0_i32_1 : i32, i32, i32
  }
}

</mosaic_0001>

<bundles_post_ra>
// kernel: tpu_custom_call.1
= control target key start
LH: loop header
LB: loop body
LE: loop exit
PB: predicated region body
PF: predicated region fallthrough
CT: control target
= control target key end

     0   :  { %7 = vsyncpa [#allocation3], 0  ;;  %s340_s0 = inlined_call_operand.hbm [shape: f32[40,512], index: 0, kind: input, shape index: {}]   ;;  %s341_s1 = inlined_call_operand.hbm [shape: f32[8,40], index: 1, kind: input, shape index: {}]   ;;  %s342_s2 = inlined_call_operand.vmem [shape: f32[2,8,1], index: 2, kind: output, shape index: {}]  }
   0x1   :  { %8 = vsyncpa [#allocation5], 0  ;;  %s292_s9 = smov [#allocation2]  }
   0x2   :  { %s14_s10 = sshll.u32 %s292_s9, 4  ;;  %s15_s10 = int_to_ptr.vmem [resolvable:$true] %s14_s10 }
   0x3   :  { %s256_s11 = scalar_lea.vmem %s15_s10, 2560  ;;  %p261_p1 = scmp.lt.s32.totalorder %s15_s10, %s15_s10 }
   0x4   :  { %p257_p0 = scmp.ne.s32.totalorder %s15_s10, %s256_s11  ;;  %p262_p2 = scmp.lt.s32.totalorder %s256_s11, %s256_s11 }
   0x6   :  { %p263_p3 = por %p262_p2, %p261_p1 }
   0x8   :  { %p264_p4 = pnand %p263_p3, %p257_p0 }
   0xa   :  { %267 = shalt.err (!%p264_p4)
}
   0xb   :  { %s293_s12 = smov 512   ;;  %s294_s13 = smov 32  }
   0xc   :  { %20 = dma.hbm_to_vmem [thread:$0]  %s340_s0, 2560, %s15_s10, [#allocation3], %s293_s12, %s293_s12, %s294_s13  }
   0xd   :  { %s295_s16 = smov [#allocation4]  }
   0xe   :  { %s27_s17 = sshll.u32 %s295_s16, 4  ;;  %s28_s17 = int_to_ptr.vmem [resolvable:$true] %s27_s17 }
   0xf   :  { %s276_s18 = scalar_lea.vmem %s28_s17, 128  ;;  %p281_p6 = scmp.lt.s32.totalorder %s28_s17, %s28_s17 }
  0x10   :  { %p277_p5 = scmp.ne.s32.totalorder %s28_s17, %s276_s18  ;;  %p282_p7 = scmp.lt.s32.totalorder %s276_s18, %s276_s18 }
  0x12   :  { %p283_p8 = por %p282_p7, %p281_p6 }
  0x14   :  { %p284_p9 = pnand %p283_p8, %p277_p5 }
  0x16   :  { %287 = shalt.err (!%p284_p9)
}
  0x17   :  { %30 = dma.hbm_to_vmem [thread:$0]  %s341_s1, 128, %s28_s17, [#allocation5]  }
  0x18   :  { %288 = dma.done.wait [#allocation3], 2560  }
  0x19   :  { %289 = vsyncadd [#allocation3], 4294964736 }
  0x1a   :  { %290 = dma.done.wait [#allocation5], 128  }
  0x1b   :  { %291 = vsyncadd [#allocation5], 4294967168  ;;  %vm41_vm0 = vcmask 7168   ;;  %v296_v0 = vmov 0.0   ;;  %v62_v1 = vld [vmem:[#allocation2 + $0x88] sm:$0xff]  ;;  %v61_v2 = vld [vmem:[#allocation2 + $0x80] sm:$0xff] }
  0x1c   :  { %42 = vst.msk [vmem:[%s342_s2] sm:$0xff] %vm41_vm0, %v296_v0  ;;  %43 = vst.msk [vmem:[%s342_s2 + $0x8] sm:$0xff] %vm41_vm0, %v296_v0  ;;  %133 = vmatprep.mubr.f32.mxu0 %v296_v0  ;;  %204 = vmatprep.mubr.f32.mxu1 %v296_v0  ;;  %v58_v3 = vld [vmem:[#allocation2 + $0x68] sm:$0xff]  ;;  %v64_v4 = vld [vmem:[#allocation2 + $0x98] sm:$0xff]  ;;  %vm65_vm1 = vcmask 326656  }
  0x1d   :  { %91 = vmatprep.subr.mxu0 %v62_v1  ;;  %v57_v5 = vld [vmem:[#allocation2 + $0x60] sm:$0xff]  ;;  %v63_v6 = vld [vmem:[#allocation2 + $0x90] sm:$0xff]  ;;  %162 = vmatprep.subr.mxu1 %v64_v4  ;;  %v54_v7 = vld [vmem:[#allocation2 + $0x48] sm:$0xff] }
  0x1e   :  { %92 = vmatpush1.msra.mxu0 %v61_v2  ;;  %v60_v8 = vld [vmem:[#allocation2 + $0x78] sm:$0xff]  ;;  %163 = vmatpush1.msra.mxu1 %v63_v6  ;;  %v53_v9 = vld [vmem:[#allocation2 + $0x40] sm:$0xff]  ;;  %v59_v10 = vld [vmem:[#allocation2 + $0x70] sm:$0xff] }
  0x1f   :  { %93 = vmatprep.subr.mxu0 %v58_v3  ;;  %v56_v11 = vld [vmem:[#allocation2 + $0x58] sm:$0xff]  ;;  %164 = vmatprep.subr.mxu1 %v60_v8  ;;  %v50_v12 = vld [vmem:[#allocation2 + $0x28] sm:$0xff]  ;;  %v55_v13 = vld [vmem:[#allocation2 + $0x50] sm:$0xff] }
  0x20   :  { %94 = vmatpush1.msra.mxu0 %v57_v5  ;;  %165 = vmatpush1.msra.mxu1 %v59_v10  ;;  %v49_v14 = vld [vmem:[#allocation2 + $0x20] sm:$0xff]  ;;  %v52_v15 = vld [vmem:[#allocation2 + $0x38] sm:$0xff]  ;;  %v46_v16 = vld [vmem:[#allocation2 + $0x8] sm:$0xff] }
  0x21   :  { %95 = vmatprep.subr.mxu0 %v54_v7  ;;  %166 = vmatprep.subr.mxu1 %v56_v11  ;;  %v51_v17 = vld [vmem:[#allocation2 + $0x30] sm:$0xff]  ;;  %v45_v18 = vld [vmem:[#allocation2] sm:$0xff]  ;;  %v48_v19 = vld [vmem:[#allocation2 + $0x18] sm:$0xff] }
  0x22   :  { %96 = vmatpush1.msra.mxu0 %v53_v9  ;;  %167 = vmatpush1.msra.mxu1 %v55_v13  ;;  %v44_v20 = vld [vmem:[#allocation4] sm:$0xff]  ;;  %v47_v21 = vld [vmem:[#allocation2 + $0x10] sm:$0xff] }
  0x23   :  { %97 = vmatprep.subr.mxu0 %v50_v12  ;;  %168 = vmatprep.subr.mxu1 %v52_v15  ;;  %v211_v36 = vld [vmem:[%s342_s2] sm:$0xff]  ;;  %v241_v39 = vld [vmem:[%s342_s2 + $0x8] sm:$0xff] }
  0x24   :  { %98 = vmatpush1.msra.mxu0 %v49_v14  ;;  %169 = vmatpush1.msra.mxu1 %v51_v17 }
  0x25   :  { %99 = vmatprep.subr.mxu0 %v46_v16  ;;  %170 = vmatprep.subr.mxu1 %v48_v19 }
  0x26   :  { %100 = vmatpush1.msra.mxu0 %v45_v18  ;;  %171 = vmatpush1.msra.mxu1 %v47_v21 }
  0x27   :  { %239 = vmatmul.mubr.msk.f32.vlgmr.msra.gmra.mxu0 %vm65_vm1, %v44_v20  ;;  %240 = vmatmul.mubr.msk.f32.vlgmr.msra.gmra.mxu1 %vm65_vm1, %v44_v20 }
  0xe7   :  { %v135_v22 = vpop.f32.mrf.mxu0  ;;  %v206_v24 = vpop.f32.mrf.mxu1 }
  0xe8   :  { %v222_v25 = vmul.f32 %v135_v22, %v135_v22  ;;  %v224_v28 = vmul.f32 %v206_v24, %v206_v24 }
  0xe9   :  { %v137_v23 = vpop.f32.mrf.mxu0  ;;  %v208_v31 = vpop.f32.mrf.mxu1 }
  0xea   :  { %v212_v26 = vadd.f32 %v137_v23, %v135_v22  ;;  %v223_v27 = vmul.f32 %v137_v23, %v137_v23  ;;  %v225_v34 = vmul.f32 %v208_v31, %v208_v31 }
  0xec   :  { %v226_v29 = vadd.f32 %v223_v27, %v222_v25  ;;  %v213_v30 = vadd.f32 %v212_v26, %v206_v24 }
  0xee   :  { %v214_v32 = vadd.f32 %v213_v30, %v208_v31  ;;  %v227_v33 = vadd.f32 %v226_v29, %v224_v28 }
  0xf0   :  { %215 = vadd.xlane.f32.xlu0 %v214_v32  ;;  %v228_v35 = vadd.f32 %v227_v33, %v225_v34 }
  0xf4   :  { %229 = vadd.xlane.f32.xlu0 %v228_v35 }
 0x179   :  { %v216_v37 = vpop.xlane.xlu0 %215 }
 0x17a   :  { %v217_v38 = vadd.f32 %v216_v37, %v211_v36 }
 0x17c   :  { %219 = vst.msk [vmem:[%s342_s2] sm:$0xff] %vm41_vm0, %v217_v38 }
 0x17d   :  { %v230_v40 = vpop.xlane.xlu0 %229 }
 0x17e   :  { %v231_v41 = vadd.f32 %v241_v39, %v230_v40 }
 0x180   :  { %242 = vst.msk [vmem:[%s342_s2 + $0x8] sm:$0xff] %vm41_vm0, %v231_v41 }
 0x181   :  { %237 = vsyncpa [#allocation3], 1 }
 0x182   :  { %238 = vsyncpa [#allocation5], 1 }

</bundles_post_ra>
